<compile_context>
chip_gen: v5e
topology: v5e:2x2
jax: 0.10.0
libtpu: 0.0.40
codegen_flags: <defaults>
</compile_context>

<pallas_src>
import numpy as np
import jax
import jax.numpy as jnp
from jax import lax
from jax.experimental import pallas as pl
from jax.experimental.pallas import tpu as pltpu


def _round_up(x: int, m: int) -> int:
    return (x + m - 1) // m * m


def _cdiv(a: int, b: int) -> int:
    return -(-a // b)


# ----------------------------------------------------------------------------
# Deterministic DPSS (Slepian) windows, computed with numpy (no scipy).
# ----------------------------------------------------------------------------
def dpss_windows(N: int, NW: float, Kmax: int) -> np.ndarray:
    """Return (Kmax, N) DPSS tapers (unit 2-norm eigenvectors)."""
    W = NW / N
    t = np.arange(N, dtype=np.float64)
    diag = ((N - 1 - 2.0 * t) / 2.0) ** 2 * np.cos(2.0 * np.pi * W)
    off = t[1:] * (N - t[1:]) / 2.0
    A = np.diag(diag) + np.diag(off, 1) + np.diag(off, -1)
    eigvals, eigvecs = np.linalg.eigh(A)
    order = np.argsort(eigvals)[::-1][:Kmax]
    wins = eigvecs[:, order].T.copy()  # (Kmax, N), each unit 2-norm
    # scipy-like sign conventions (irrelevant for power, kept for parity):
    for k in range(Kmax):
        if k % 2 == 0:
            if wins[k].sum() < 0:
                wins[k] *= -1.0
        else:
            nz = wins[k][np.abs(wins[k]) > max(1e-7, 1.0 / N)]
            if nz.size and nz[0] < 0:
                wins[k] *= -1.0
    return wins.astype(np.float32)


def calculate_num_tapers(n_fft: int, sample_rate: float, frequency_resolution: float):
    window_size_seconds = n_fft / sample_rate
    time_halfbandwidth_product = max(window_size_seconds * frequency_resolution, 1)
    num_tapers = int(2 * time_halfbandwidth_product - 1)
    return int(time_halfbandwidth_product), num_tapers


# ----------------------------------------------------------------------------
# Kernels.  y = frames @ basis_k -> [Re | Im], power accumulated in f32.
# ----------------------------------------------------------------------------
def _accum_power(y, P, packed_ny, o_ref, ny_ref):
    re = y[:, :P]
    im = y[:, P:]
    if packed_ny:
        # Column 0 of `im` carries the packed Nyquist real part (true Im(DC)=0).
        lane = lax.broadcasted_iota(jnp.int32, re.shape, 1)
        o_ref[...] += re * re + jnp.where(lane == 0, 0.0, im * im)
        nyq = im[:, 0:1]
        ny_ref[...] += nyq * nyq
    else:
        o_ref[...] += re * re + im * im


def _make_resident_kernel(P, num_tapers, packed_ny):
    """Basis fully VMEM-resident; grid = (M tiles,), taper loop inside kernel."""

    def body(frames_ref, basis_ref, o_ref, ny_ref):
        o_ref[...] = jnp.zeros_like(o_ref)
        if packed_ny:
            ny_ref[...] = jnp.zeros_like(ny_ref)

        def step(k, carry):
            y = jnp.dot(frames_ref[...], basis_ref[k],
                        preferred_element_type=jnp.float32)
            _accum_power(y, P, packed_ny, o_ref, ny_ref)
            return carry

        lax.fori_loop(0, num_tapers, step, 0, unroll=True)

    if packed_ny:
        def kernel(frames_ref, basis_ref, o_ref, ny_ref):
            body(frames_ref, basis_ref, o_ref, ny_ref)
    else:
        def kernel(frames_ref, basis_ref, o_ref):
            body(frames_ref, basis_ref, o_ref, None)
    return kernel


def _make_streaming_kernel(P, num_tapers, packed_ny):
    """Per-taper basis streaming; grid = (M tiles, tapers), output VMEM-resident."""

    def body(frames_ref, basis_ref, o_ref, ny_ref):
        k = pl.program_id(1)

        @pl.when(k == 0)
        def _init():
            o_ref[...] = jnp.zeros_like(o_ref)
            if packed_ny:
                ny_ref[...] = jnp.zeros_like(ny_ref)

        y = jnp.dot(frames_ref[...], basis_ref[...],
                    preferred_element_type=jnp.float32)
        _accum_power(y, P, packed_ny, o_ref, ny_ref)

    if packed_ny:
        def kernel(frames_ref, basis_ref, o_ref, ny_ref):
            body(frames_ref, basis_ref, o_ref, ny_ref)
    else:
        def kernel(frames_ref, basis_ref, o_ref):
            body(frames_ref, basis_ref, o_ref, None)
    return kernel


# ----------------------------------------------------------------------------
# Wrapper.
# ----------------------------------------------------------------------------
def multitaper_spectrogram(x, *, sample_rate: int, n_fft: int,
                           frequency_resolution: float = 1.0,
                           compute_dtype=jnp.bfloat16, tile_m: int = 1024,
                           basis_resident=None):
    """x: (B, C, T) or (C, T) float -> (..., n_freq, n_frames) float32."""
    if x.ndim == 2:
        return multitaper_spectrogram(
            x[None], sample_rate=sample_rate, n_fft=n_fft,
            frequency_resolution=frequency_resolution,
            compute_dtype=compute_dtype, tile_m=tile_m,
            basis_resident=basis_resident)[0]
    assert x.ndim == 3, "expected (batch, channels, time)"
    B, C, T = x.shape
    hop_length = n_fft // 2
    n_freq = n_fft // 2 + 1
    pad = n_fft // 2
    assert pad < T, "reflect padding requires n_fft // 2 < n_timesteps"
    # center=True, pad=0  ->  n_frames = T // hop + 1  (torch.stft convention)
    n_frames = T // hop_length + 1

    NW, num_tapers = calculate_num_tapers(n_fft, sample_rate, frequency_resolution)
    # Fold the 1/num_tapers (mean over tapers) into the tapers -> no finalize.
    tapers = dpss_windows(n_fft, NW, num_tapers) * np.float32(1.0 / np.sqrt(num_tapers))

    # Fused lane-dense [Re | Im] DFT basis.  When n_fft//2 is a multiple of 128,
    # use P = n_fft//2 and pack the Nyquist cos column into the Im(DC) slot
    # (Im at f=0 is identically zero); otherwise pad n_freq up to 128 lanes.
    packed_ny = n_fft >= 256 and (n_fft // 2) % 128 == 0
    P = n_fft // 2 if packed_ny else _round_up(n_freq, 128)

    n = np.arange(n_fft, dtype=np.float64)[:, None]
    cs = np.zeros((n_fft, 2 * P), np.float32)      # small f64-accurate trig table
    if packed_ny:
        f = np.arange(P, dtype=np.float64)[None, :]
        ang = 2.0 * np.pi * n * f / n_fft
        cs[:, :P] = np.cos(ang)
        cs[:, P:] = -np.sin(ang)
        cs[:, P] = np.cos(np.pi * n[:, 0])          # Nyquist cos -> Im(DC) slot
    else:
        f = np.arange(n_freq, dtype=np.float64)[None, :]
        ang = 2.0 * np.pi * n * f / n_fft
        cs[:, :n_freq] = np.cos(ang)
        cs[:, P:P + n_freq] = -np.sin(ang)
    # Outer product with the tapers is done on device so the big (K, n_fft, 2P)
    # array never exists as a host f32 constant embedded in the trace.
    basis = (jnp.asarray(tapers)[:, :, None]
             * jnp.asarray(cs)[None]).astype(compute_dtype)      # (K, n_fft, 2P)

    dsize = jnp.dtype(compute_dtype).itemsize
    basis_bytes = num_tapers * n_fft * 2 * P * dsize

    # --- glue: cast FIRST, then centered reflect-pad + hop-strided framing.
    # TODO(synk): framing still materializes ~2x HBM traffic (hop = n_fft/2);
    # could be folded into the kernel with overlapping blocks / manual DMA.
    x_pad = jnp.pad(x.astype(compute_dtype), ((0, 0), (0, 0), (pad, pad)),
                    mode="reflect")
    idx = np.arange(n_frames)[:, None] * hop_length + np.arange(n_fft)[None, :]
    frames2d = x_pad[:, :, idx].reshape(B * C * n_frames, n_fft)

    M = B * C * n_frames
    m_align = 16 if dsize == 2 else 8
    M_pad = _round_up(M, m_align)

    # Per-chip VMEM capacity (v5e/v6e: 128 MiB, v7x: 64 MiB per TensorCore).
    try:
        vmem_cap = int(pltpu.get_tpu_info().vmem_capacity_bytes)
    except Exception:
        vmem_cap = 64 * 1024 * 1024
    vmem_budget = min(int(0.85 * vmem_cap), 100 * 1024 * 1024)

    if basis_resident is None:
        # Keep the basis VMEM-resident when it fits comfortably per core
        # (<= 32 MiB on v7x, <= 64 MiB on v5e/v6e); otherwise stream per taper.
        basis_resident = basis_bytes <= vmem_cap // 2
    basis_resident = bool(basis_resident)

    def vmem_est(tm, resident):
        e = 2 * tm * n_fft * dsize            # double-buffered frame tiles
        e += 2 * tm * P * 4 + 2 * tm * 4      # double-buffered f32 output (+Nyquist)
        e += basis_bytes if resident else 2 * n_fft * 2 * P * dsize
        return int(1.25 * e)

    TM = _round_up(min(int(tile_m), M_pad), m_align)
    if M_pad > m_align:       # >= 2 M tiles so v7x megacore uses both TensorCores
        TM = min(TM, _round_up(_cdiv(M_pad, 2), m_align))
    while vmem_est(TM, basis_resident) > vmem_budget and TM > m_align:
        TM = max(m_align, _round_up(TM // 2, m_align))
    M_pad = _round_up(M_pad, TM)

    if M_pad > M:
        frames2d = jnp.pad(frames2d, ((0, M_pad - M), (0, 0)))

    vmem_limit = int(min(vmem_budget,
                         max(vmem_est(TM, basis_resident), 32 * 1024 * 1024)))

    out_shape = jax.ShapeDtypeStruct((M_pad, P), jnp.float32)
    ny_shape = jax.ShapeDtypeStruct((M_pad, 1), jnp.float32)

    if basis_resident:
        kernel = _make_resident_kernel(P, num_tapers, packed_ny)
        grid = (M_pad // TM,)
        in_specs = [
            pl.BlockSpec((TM, n_fft), lambda i: (i, 0)),
            # Full basis, constant block index -> fetched from HBM exactly once,
            # single-buffered (no per-M-tile refetch).
            pl.BlockSpec((num_tapers, n_fft, 2 * P), lambda i: (0, 0, 0),
                         pipeline_mode=pl.Buffered(1)),
        ]
        o_spec = pl.BlockSpec((TM, P), lambda i: (i, 0))
        ny_spec = pl.BlockSpec((TM, 1), lambda i: (i, 0))
        dims = ("parallel",)
    else:
        kernel = _make_streaming_kernel(P, num_tapers, packed_ny)
        grid = (M_pad // TM, num_tapers)         # taper (reduction) axis last
        in_specs = [
            pl.BlockSpec((TM, n_fft), lambda i, k: (i, 0)),
            pl.BlockSpec((None, n_fft, 2 * P), lambda i, k: (k, 0, 0)),
        ]
        o_spec = pl.BlockSpec((TM, P), lambda i, k: (i, 0))
        ny_spec = pl.BlockSpec((TM, 1), lambda i, k: (i, 0))
        dims = ("parallel", "arbitrary")

    result = pl.pallas_call(
        kernel,
        out_shape=(out_shape, ny_shape) if packed_ny else out_shape,
        grid_spec=pltpu.PrefetchScalarGridSpec(
            num_scalar_prefetch=0,
            grid=grid,
            in_specs=in_specs,
            out_specs=(o_spec, ny_spec) if packed_ny else o_spec,
        ),
        compiler_params=pltpu.CompilerParams(
            dimension_semantics=dims,
            vmem_limit_bytes=vmem_limit),
    )(frames2d, basis)

    # TODO(synk): the crop/concat + transpose below are extra XLA passes over the
    # result; could be folded into the kernel by computing basis^T @ frames^T per
    # (b, c) so the store already lands in (n_freq, n_frames) orientation.
    if packed_ny:
        out_main, out_ny = result
        out = jnp.concatenate([out_main[:M], out_ny[:M]], axis=-1)   # (M, n_freq)
    else:
        out = result[:M, :n_freq]
    out = out.reshape(B, C, n_frames, n_freq)
    return out.transpose(0, 1, 3, 2)


# ----------------------------------------------------------------------------
# Pure-JAX reference (rfft) for sanity checks.
# ----------------------------------------------------------------------------
def _reference(x, *, sample_rate, n_fft, frequency_resolution=1.0):
    B, C, T = x.shape
    hop = n_fft // 2
    n_freq = n_fft // 2 + 1
    n_frames = T // hop + 1
    NW, K = calculate_num_tapers(n_fft, sample_rate, frequency_resolution)
    tapers = jnp.asarray(dpss_windows(n_fft, NW, K))
    pad = n_fft // 2
    x_pad = jnp.pad(x, ((0, 0), (0, 0), (pad, pad)), mode="reflect")
    idx = np.arange(n_frames)[:, None] * hop + np.arange(n_fft)[None, :]
    frames = x_pad[:, :, idx]                              # (B, C, F, n_fft)
    acc = jnp.zeros((B, C, n_frames, n_freq), jnp.float32)
    for k in range(K):
        wf = frames * tapers[k][None, None, None, :]
        spec = jnp.fft.rfft(wf, n=n_fft, axis=-1)
        acc = acc + jnp.abs(spec).astype(jnp.float32) ** 2
    return (acc / K).transpose(0, 1, 3, 2)


if __name__ == "__main__":
    key = jax.random.PRNGKey(0)
    key_a, key_b = jax.random.split(key)

    # --- Config A: n_fft=16, sample_rate=8 -> NW=2, 3 tapers (lane-padded path)
    sr_a, nfft_a = 8, 16
    B, C, T = 2, 4, 64
    x_a = jax.random.normal(key_a, (B, C, T), dtype=jnp.float32)
    ref_a = np.asarray(jax.block_until_ready(
        _reference(x_a, sample_rate=sr_a, n_fft=nfft_a)))

    out = jax.block_until_ready(multitaper_spectrogram(
        x_a, sample_rate=sr_a, n_fft=nfft_a, compute_dtype=jnp.float32))
    assert out.shape == (B, C, nfft_a // 2 + 1, T // (nfft_a // 2) + 1)
    np.testing.assert_allclose(np.asarray(out), ref_a, rtol=1e-4, atol=1e-4)

    out = jax.block_until_ready(multitaper_spectrogram(
        x_a, sample_rate=sr_a, n_fft=nfft_a, compute_dtype=jnp.float32,
        basis_resident=False))                      # exercise streaming fallback
    np.testing.assert_allclose(np.asarray(out), ref_a, rtol=1e-4, atol=1e-4)

    out = jax.block_until_ready(multitaper_spectrogram(
        x_a, sample_rate=sr_a, n_fft=nfft_a))       # default bf16 MXU path
    rel = float(np.max(np.abs(np.asarray(out) - ref_a))
                / (np.max(np.abs(ref_a)) + 1e-12))
    assert rel < 0.1, f"bf16 path error too large: {rel}"

    # --- Config B: n_fft=256, sample_rate=64 -> NW=4, 7 tapers (packed-Nyquist path)
    sr_b, nfft_b = 64, 256
    Bb, Cb, Tb = 1, 2, 512
    x_b = jax.random.normal(key_b, (Bb, Cb, Tb), dtype=jnp.float32)
    ref_b = np.asarray(jax.block_until_ready(
        _reference(x_b, sample_rate=sr_b, n_fft=nfft_b)))

    out = jax.block_until_ready(multitaper_spectrogram(
        x_b, sample_rate=sr_b, n_fft=nfft_b, compute_dtype=jnp.float32))
    assert out.shape == (Bb, Cb, nfft_b // 2 + 1, Tb // (nfft_b // 2) + 1)
    np.testing.assert_allclose(np.asarray(out), ref_b, rtol=2e-4, atol=2e-4)

    out = jax.block_until_ready(multitaper_spectrogram(
        x_b, sample_rate=sr_b, n_fft=nfft_b, compute_dtype=jnp.float32,
        basis_resident=False))                      # packed + streaming combination
    np.testing.assert_allclose(np.asarray(out), ref_b, rtol=2e-4, atol=2e-4)

    out = jax.block_until_ready(multitaper_spectrogram(
        x_b, sample_rate=sr_b, n_fft=nfft_b))       # packed + bf16 default path
    rel = float(np.max(np.abs(np.asarray(out) - ref_b))
                / (np.max(np.abs(ref_b)) + 1e-12))
    assert rel < 0.1, f"bf16 path error too large: {rel}"

    print("KERNEL_OK")
</pallas_src>

<mosaic_0001>
module attributes {stable_mosaic.version = 11 : i64} {
  func.func @kernel(%arg0: i32, %arg1: memref<40x16xf32, #tpu.memory_space<vmem>>, %arg2: memref<3x16x256xf32, #tpu.memory_space<vmem>>, %arg3: memref<40x128xf32, #tpu.memory_space<vmem>>) attributes {dimension_semantics = [#tpu.dimension_semantics<parallel>], iteration_bounds = array<i64: 2>, scalar_prefetch = 0 : i64, scratch_operands = 0 : i64, tpu.core_type = #tpu.core_type<tc>, window_params = [{transform_indices = @transform_0, window_bounds = array<i64: 40, 16>}, {pipeline_mode = #tpu.pipeline_mode<synchronous>, transform_indices = @transform_1, window_bounds = array<i64: 3, 16, 256>}, {transform_indices = @transform_2, window_bounds = array<i64: 40, 128>}]} {
    %cst = arith.constant 0.000000e+00 : f32
    %0 = vector.broadcast %cst : f32 to vector<40x128xf32>
    %c0 = arith.constant 0 : index
    %c0_0 = arith.constant 0 : index
    %1 = vector.load %arg3[%c0, %c0_0] : memref<40x128xf32, #tpu.memory_space<vmem>>, vector<40x128xf32>
    tpu.vector_store %arg3[%c0, %c0_0], %0 {strides = array<i32>} : memref<40x128xf32, #tpu.memory_space<vmem>>, vector<40x128xf32>,
    %c0_i32 = arith.constant 0 : i32
    %c0_1 = arith.constant 0 : index
    %c0_2 = arith.constant 0 : index
    %2 = vector.load %arg1[%c0_1, %c0_2] : memref<40x16xf32, #tpu.memory_space<vmem>>, vector<40x16xf32>
    %3 = arith.index_cast %c0_i32 : i32 to index
    %c0_3 = arith.constant 0 : index
    %c0_4 = arith.constant 0 : index
    %4 = vector.load %arg2[%3, %c0_3, %c0_4] : memref<3x16x256xf32, #tpu.memory_space<vmem>>, vector<1x16x256xf32>
    %5 = vector.shape_cast %4 : vector<1x16x256xf32> to vector<16x256xf32>
    %cst_5 = arith.constant dense<0.000000e+00> : vector<40x256xf32>
    %6 = tpu.matmul %2, %5, %cst_5 {dimension_numbers = #tpu.dot_dimension_numbers<[1], [0], [0], [1], [0, 0, 1, 1], [], []>} : vector<40x16xf32>, vector<16x256xf32>, vector<40x256xf32> -> vector<40x256xf32>
    %7 = vector.extract_strided_slice %6 {offsets = [0, 0], sizes = [40, 128], strides = [1, 1]} : vector<40x256xf32> to vector<40x128xf32>
    %8 = vector.extract_strided_slice %6 {offsets = [0, 128], sizes = [40, 128], strides = [1, 1]} : vector<40x256xf32> to vector<40x128xf32>
    %c0_6 = arith.constant 0 : index
    %c0_7 = arith.constant 0 : index
    %9 = vector.load %arg3[%c0_6, %c0_7] : memref<40x128xf32, #tpu.memory_space<vmem>>, vector<40x128xf32>
    %10 = arith.mulf %7, %7 : vector<40x128xf32>
    %11 = arith.mulf %8, %8 : vector<40x128xf32>
    %12 = arith.addf %10, %11 : vector<40x128xf32>
    %13 = arith.addf %9, %12 : vector<40x128xf32>
    %c0_8 = arith.constant 0 : index
    %c0_9 = arith.constant 0 : index
    %14 = vector.load %arg3[%c0_8, %c0_9] : memref<40x128xf32, #tpu.memory_space<vmem>>, vector<40x128xf32>
    tpu.vector_store %arg3[%c0_8, %c0_9], %13 {strides = array<i32>} : memref<40x128xf32, #tpu.memory_space<vmem>>, vector<40x128xf32>,
    %c1_i32 = arith.constant 1 : i32
    %c0_10 = arith.constant 0 : index
    %c0_11 = arith.constant 0 : index
    %15 = vector.load %arg1[%c0_10, %c0_11] : memref<40x16xf32, #tpu.memory_space<vmem>>, vector<40x16xf32>
    %16 = arith.index_cast %c1_i32 : i32 to index
    %c0_12 = arith.constant 0 : index
    %c0_13 = arith.constant 0 : index
    %17 = vector.load %arg2[%16, %c0_12, %c0_13] : memref<3x16x256xf32, #tpu.memory_space<vmem>>, vector<1x16x256xf32>
    %18 = vector.shape_cast %17 : vector<1x16x256xf32> to vector<16x256xf32>
    %cst_14 = arith.constant dense<0.000000e+00> : vector<40x256xf32>
    %19 = tpu.matmul %15, %18, %cst_14 {dimension_numbers = #tpu.dot_dimension_numbers<[1], [0], [0], [1], [0, 0, 1, 1], [], []>} : vector<40x16xf32>, vector<16x256xf32>, vector<40x256xf32> -> vector<40x256xf32>
    %20 = vector.extract_strided_slice %19 {offsets = [0, 0], sizes = [40, 128], strides = [1, 1]} : vector<40x256xf32> to vector<40x128xf32>
    %21 = vector.extract_strided_slice %19 {offsets = [0, 128], sizes = [40, 128], strides = [1, 1]} : vector<40x256xf32> to vector<40x128xf32>
    %c0_15 = arith.constant 0 : index
    %c0_16 = arith.constant 0 : index
    %22 = vector.load %arg3[%c0_15, %c0_16] : memref<40x128xf32, #tpu.memory_space<vmem>>, vector<40x128xf32>
    %23 = arith.mulf %20, %20 : vector<40x128xf32>
    %24 = arith.mulf %21, %21 : vector<40x128xf32>
    %25 = arith.addf %23, %24 : vector<40x128xf32>
    %26 = arith.addf %22, %25 : vector<40x128xf32>
    %c0_17 = arith.constant 0 : index
    %c0_18 = arith.constant 0 : index
    %27 = vector.load %arg3[%c0_17, %c0_18] : memref<40x128xf32, #tpu.memory_space<vmem>>, vector<40x128xf32>
    tpu.vector_store %arg3[%c0_17, %c0_18], %26 {strides = array<i32>} : memref<40x128xf32, #tpu.memory_space<vmem>>, vector<40x128xf32>,
    %c2_i32 = arith.constant 2 : i32
    %c0_19 = arith.constant 0 : index
    %c0_20 = arith.constant 0 : index
    %28 = vector.load %arg1[%c0_19, %c0_20] : memref<40x16xf32, #tpu.memory_space<vmem>>, vector<40x16xf32>
    %29 = arith.index_cast %c2_i32 : i32 to index
    %c0_21 = arith.constant 0 : index
    %c0_22 = arith.constant 0 : index
    %30 = vector.load %arg2[%29, %c0_21, %c0_22] : memref<3x16x256xf32, #tpu.memory_space<vmem>>, vector<1x16x256xf32>
    %31 = vector.shape_cast %30 : vector<1x16x256xf32> to vector<16x256xf32>
    %cst_23 = arith.constant dense<0.000000e+00> : vector<40x256xf32>
    %32 = tpu.matmul %28, %31, %cst_23 {dimension_numbers = #tpu.dot_dimension_numbers<[1], [0], [0], [1], [0, 0, 1, 1], [], []>} : vector<40x16xf32>, vector<16x256xf32>, vector<40x256xf32> -> vector<40x256xf32>
    %33 = vector.extract_strided_slice %32 {offsets = [0, 0], sizes = [40, 128], strides = [1, 1]} : vector<40x256xf32> to vector<40x128xf32>
    %34 = vector.extract_strided_slice %32 {offsets = [0, 128], sizes = [40, 128], strides = [1, 1]} : vector<40x256xf32> to vector<40x128xf32>
    %c0_24 = arith.constant 0 : index
    %c0_25 = arith.constant 0 : index
    %35 = vector.load %arg3[%c0_24, %c0_25] : memref<40x128xf32, #tpu.memory_space<vmem>>, vector<40x128xf32>
    %36 = arith.mulf %33, %33 : vector<40x128xf32>
    %37 = arith.mulf %34, %34 : vector<40x128xf32>
    %38 = arith.addf %36, %37 : vector<40x128xf32>
    %39 = arith.addf %35, %38 : vector<40x128xf32>
    %c0_26 = arith.constant 0 : index
    %c0_27 = arith.constant 0 : index
    %40 = vector.load %arg3[%c0_26, %c0_27] : memref<40x128xf32, #tpu.memory_space<vmem>>, vector<40x128xf32>
    tpu.vector_store %arg3[%c0_26, %c0_27], %39 {strides = array<i32>} : memref<40x128xf32, #tpu.memory_space<vmem>>, vector<40x128xf32>,
    %c3_i32 = arith.constant 3 : i32
    return
  }
  func.func @transform_0(%arg0: i32) -> (i32, i32) {
    %c0_i32 = arith.constant 0 : i32
    %c0_i32_0 = arith.constant 0 : i32
    return %arg0, %c0_i32 : i32, i32
  }
  func.func @transform_1(%arg0: i32) -> (i32, i32, i32) {
    %c0_i32 = arith.constant 0 : i32
    %c0_i32_0 = arith.constant 0 : i32
    %c0_i32_1 = arith.constant 0 : i32
    %c0_i32_2 = arith.constant 0 : i32
    return %c0_i32, %c0_i32_0, %c0_i32_1 : i32, i32, i32
  }
  func.func @transform_2(%arg0: i32) -> (i32, i32) {
    %c0_i32 = arith.constant 0 : i32
    %c0_i32_0 = arith.constant 0 : i32
    return %arg0, %c0_i32 : i32, i32
  }
}

</mosaic_0001>

<bundles_post_ra>
// kernel: tpu_custom_call.1
= control target key start
LH: loop header
LB: loop body
LE: loop exit
PB: predicated region body
PF: predicated region fallthrough
CT: control target
= control target key end

     0   :  { %7 = vsyncpa [#allocation3], 0  ;;  %s922_s0 = inlined_call_operand.vmem [shape: f32[80,16], index: 0, kind: input, shape index: {}]   ;;  %s923_s1 = inlined_call_operand.vmem [shape: f32[3,16,256], index: 1, kind: input, shape index: {}]   ;;  %s924_s2 = inlined_call_operand.hbm [shape: f32[80,128], index: 2, kind: output, shape index: {}]  }
   0x1   :  { %9 = vsyncpa [#allocation3 + $0x1], 0  ;;  %s760_s9 = smov 0   ;;  %s762_s10 = smov 0  }
   0x2   :  { %s764_s11 = smov 0   ;;  %s766_s12 = smov 0  }
   0x3 LB: > { %s781_s13 = sadd.s32 4294967295, %s741_s12   ;;  %s585_s14 = sadd.s32 4294967294, %s741_s12   ;;  %s741_s12 = sphi %s766_s12, %s930_s12   ;;  %s737_s11 = sphi %s764_s11, %s929_s11   ;;  %s733_s10 = sphi %s762_s10, %s928_s10   ;;  %s729_s9 = sphi %s760_s9, %s927_s9  }
   0x4   : > { %s785_s15 = sadd.s32 1, %s741_s12   ;;  %s69_s16 = sadd.s32 1, %s737_s11 }
   0x5   : > { %s66_s17 = ssub.s32 %s741_s12, %s785_s15  ;;  %p79_p0 = scmp.ne.s32.totalorder %s737_s11, %s733_s10 }
   0x6   : > { %p67_p1 = scmp.eq.s32.totalorder %s66_s17, 0  ;;  %p80_p2 = scmp.eq.s32.totalorder %s781_s13, 1 }
   0x7   : > { %p85_p3 = scmp.ne.s32.totalorder %s733_s10, %s729_s9  ;;  %p86_p4 = scmp.eq.s32.totalorder %s585_s14, 1 }
   0x8   : > { %s796_s18 = scalar_select %p67_p1, %s737_s11, %s69_s16  }
   0x9   : > { %p798_p5 = por %p80_p2, %p79_p0  ;;  %p802_p6 = por %p86_p4, %p85_p3 }
   0xa   : > { %p588_p7 = scmp.ge.s32.totalorder %s741_s12, 1  ;;  %p116_p8 = scmp.lt.s32.totalorder %s741_s12, 3 }
   0xc   : > { %p117_p9 = pnand %p588_p7, %p116_p8 }
   0xd   : > { %s138_s27 = smul.u32 (!%p117_p9), 5, %s781_s13  ;;  %s699_s25 = scalar_lea.hbm (!%p117_p9), %s924_s2, 80 }
   0xe   : > { %120 = sbr.rel (%p117_p9) target bundleno = 220 (0xdc), region = 28 }
   0xf   : > { %p139_p10 = scmp.lt.s32.totalorder (!%p117_p9), %s138_s27, 9  ;;  %s631_s6 = smul.u32 (!%p117_p9), 40, %s781_s13 }
  0x11   : > { %s519_s14 = scalar_lea.hbm (!%p117_p9), %s924_s2, %s631_s6 }
  0x12   : > { %s522_s16 = sshll.u32 (!%p117_p9), %s519_s14, 4  ;;  %s523_s16 = int_to_ptr.hbm [resolvable:$true] %s522_s16 }
  0x13   : > { %v157_v0 = vld [vmem:[%s923_s1 + $0x10] sm:$0xff]  ;;  %v158_v1 = vld [vmem:[%s923_s1 + $0x18] sm:$0xff]  ;;  %v155_v2 = vld [vmem:[%s923_s1] sm:$0xff]  ;;  %s932_s27 = smov (!%p139_p10, %s138_s27), 9  ;;  %vm159_vm0 = vcmask 130048   ;;  %s693_s21 = sshra.s32 %s523_s16, 4  ;;  %s694_s21 = int_to_ptr.hbm [resolvable:$true] %s693_s21 }
  0x14   : > { %632 = vmatpush.msra.mxu2 %v157_v0  ;;  %634 = vmatpush.msra.mxu3 %v158_v1  ;;  %v156_v3 = vld [vmem:[%s923_s1 + $0x8] sm:$0xff]  ;;  %v602_v4 = vld [vmem:[%s923_s1 + $0x30] sm:$0xff]  ;;  %v603_v5 = vld [vmem:[%s923_s1 + $0x38] sm:$0xff]  ;;  %s589_s23 = sshll.u32 %s932_s27, 3  ;;  %s135_s27 = sand.u32 1, %s733_s10  }
  0x15   : > { %189 = vmatpush.msra.mxu0 %v157_v0  ;;  %221 = vmatpush.msra.mxu1 %v158_v1  ;;  %v600_v6 = vld [vmem:[%s923_s1 + $0x20] sm:$0xff]  ;;  %v601_v7 = vld [vmem:[%s923_s1 + $0x28] sm:$0xff]  ;;  %v616_v8 = vld [vmem:[%s923_s1 + $0x50] sm:$0xff]  ;;  %s142_s26 = scalar_lea.vmem %s922_s0, %s589_s23  ;;  %s636_s4 = smul.u32 40, %s135_s27 }
  0x16   : > { %633 = vmatpush.msra.mxu2 %v155_v2  ;;  %635 = vmatpush.msra.mxu3 %v156_v3  ;;  %v617_v9 = vld [vmem:[%s923_s1 + $0x58] sm:$0xff]  ;;  %v614_v10 = vld [vmem:[%s923_s1 + $0x40] sm:$0xff]  ;;  %v615_v13 = vld [vmem:[%s923_s1 + $0x48] sm:$0xff]  ;;  %s508_s17 = scalar_lea.sflag [#allocation3], %s135_s27  ;;  %s695_s22 = scalar_lea.hbm %s694_s21, 40 }
  0x17   : > { %190 = vmatpush.msra.mxu0 %v155_v2  ;;  %222 = vmatpush.msra.mxu1 %v156_v3  ;;  %v153_v11 = vld [vmem:[%s142_s26 + $0x18] sm:$0xff]  ;;  %v150_v12 = vld [vmem:[%s142_s26] sm:$0xff]  ;;  %v151_v15 = vld [vmem:[%s142_s26 + $0x8] sm:$0xff]  ;;  %s881_s5 = scalar_lea.vmem [#allocation2], %s636_s4  ;;  %p696_p11 = scmp.ne.s32.totalorder %s694_s21, %s695_s22 }
  0x18   : > { %308 = vmatpush.msrb.mxu2 %v602_v4  ;;  %340 = vmatpush.msrb.mxu3 %v603_v5  ;;  %v154_v14 = vld [vmem:[%s142_s26 + $0x20] sm:$0xff]  ;;  %v152_v16 = vld [vmem:[%s142_s26 + $0x10] sm:$0xff]  ;;  %s520_s13 = sshll.u32 %s881_s5, 4  ;;  %p700_p0 = scmp.lt.s32.totalorder %s694_s21, %s924_s2  ;;  %s521_s13 = int_to_ptr.vmem [resolvable:$true] %s520_s13 }
  0x19   : > { %427 = vmatpush.msrb.mxu0 %v616_v8  ;;  %459 = vmatpush.msrb.mxu1 %v617_v9  ;;  %p697_p12 = pnand %p696_p11, %p798_p5  ;;  %p701_p1 = scmp.lt.s32.totalorder %s699_s25, %s695_s22 }
  0x1a   : > { %309 = vmatpush.msrb.mxu2 %v600_v6  ;;  %341 = vmatpush.msrb.mxu3 %v601_v7 }
  0x1b   : > { %593 = vmatmul.msk.f32.vlgmr.msra.gmra.mxu2 %vm159_vm0, %v153_v11  ;;  %598 = vmatmul.msk.f32.vlgmr.msra.gmra.mxu3 %vm159_vm0, %v153_v11  ;;  %p698_p13 = pneg %p697_p12  ;;  %p702_p2 = por %p701_p1, %p700_p0 }
  0x1c   : > { %590 = vmatmul.msk.f32.vlgmr.msra.gmra.mxu0 %vm159_vm0, %v150_v12  ;;  %595 = vmatmul.msk.f32.vlgmr.msra.gmra.mxu1 %vm159_vm0, %v150_v12 }
  0x1d   : > { %428 = vmatpush.msrb.mxu0 %v614_v10  ;;  %460 = vmatpush.msrb.mxu1 %v615_v13  ;;  %p703_p3 = pnand %p702_p2, %p698_p13 }
  0x23   : > { %594 = vmatmul.msk.f32.gmra.mxu2 %vm159_vm0, %v154_v14  ;;  %599 = vmatmul.msk.f32.gmra.mxu3 %vm159_vm0, %v154_v14 }
  0x24   : > { %591 = vmatmul.msk.f32.gmra.mxu0 %vm159_vm0, %v151_v15  ;;  %596 = vmatmul.msk.f32.gmra.mxu1 %vm159_vm0, %v151_v15 }
  0x2b   : > { %604 = vmatmul.msk.f32.vlgmr.msrb.gmra.mxu2 %vm159_vm0, %v150_v12  ;;  %609 = vmatmul.msk.f32.vlgmr.msrb.gmra.mxu3 %vm159_vm0, %v150_v12 }
  0x2c   : > { %592 = vmatmul.msk.f32.gmra.mxu0 %vm159_vm0, %v152_v16  ;;  %597 = vmatmul.msk.f32.gmra.mxu1 %vm159_vm0, %v152_v16 }
  0x33   : > { %605 = vmatmul.msk.f32.gmra.mxu2 %vm159_vm0, %v151_v15  ;;  %610 = vmatmul.msk.f32.gmra.mxu3 %vm159_vm0, %v151_v15 }
  0x34   : > { %618 = vmatmul.msk.f32.vlgmr.msrb.gmra.mxu0 %vm159_vm0, %v150_v12  ;;  %623 = vmatmul.msk.f32.vlgmr.msrb.gmra.mxu1 %vm159_vm0, %v150_v12 }
  0x3b   : > { %606 = vmatmul.msk.f32.gmra.mxu2 %vm159_vm0, %v152_v16  ;;  %611 = vmatmul.msk.f32.gmra.mxu3 %vm159_vm0, %v152_v16 }
  0x3c   : > { %619 = vmatmul.msk.f32.gmra.mxu0 %vm159_vm0, %v151_v15  ;;  %624 = vmatmul.msk.f32.gmra.mxu1 %vm159_vm0, %v151_v15 }
  0x43   : > { %607 = vmatmul.msk.f32.gmra.mxu2 %vm159_vm0, %v153_v11  ;;  %612 = vmatmul.msk.f32.gmra.mxu3 %vm159_vm0, %v153_v11 }
  0x44   : > { %620 = vmatmul.msk.f32.gmra.mxu0 %vm159_vm0, %v152_v16  ;;  %625 = vmatmul.msk.f32.gmra.mxu1 %vm159_vm0, %v152_v16 }
  0x4b   : > { %608 = vmatmul.msk.f32.gmra.mxu2 %vm159_vm0, %v154_v14  ;;  %613 = vmatmul.msk.f32.gmra.mxu3 %vm159_vm0, %v154_v14 }
  0x4c   : > { %621 = vmatmul.msk.f32.gmra.mxu0 %vm159_vm0, %v153_v11  ;;  %626 = vmatmul.msk.f32.gmra.mxu1 %vm159_vm0, %v153_v11 }
  0x54   : > { %622 = vmatmul.msk.f32.gmra.mxu0 %vm159_vm0, %v154_v14  ;;  %627 = vmatmul.msk.f32.gmra.mxu1 %vm159_vm0, %v154_v14 }
  0x99   : > { %v192_v17 = vpop.f32.mrf.mxu0  ;;  %v224_v18 = vpop.f32.mrf.mxu1 }
  0x9a   : > { %v244_v25 = vmul.f32 %v192_v17, %v192_v17  ;;  %v249_v26 = vmul.f32 %v224_v18, %v224_v18 }
  0x9c   : > { %v254_v29 = vadd.f32 %v249_v26, %v244_v25 }
  0x9e   : > { %v201_v19 = vpop.f32.mrf.mxu2  ;;  %v233_v20 = vpop.f32.mrf.mxu3 }
  0x9f   : > { %v247_v0 = vmul.f32 %v201_v19, %v201_v19  ;;  %v252_v1 = vmul.f32 %v233_v20, %v233_v20 }
  0xa1   : > { %v195_v21 = vpop.f32.mrf.mxu0  ;;  %v227_v22 = vpop.f32.mrf.mxu1  ;;  %v257_v9 = vadd.f32 %v252_v1, %v247_v0 }
  0xa2   : > { %v245_v34 = vmul.f32 %v195_v21, %v195_v21  ;;  %v250_v35 = vmul.f32 %v227_v22, %v227_v22 }
  0xa4   : > { %v255_v43 = vadd.f32 %v250_v35, %v245_v34 }
  0xa6   : > { %v204_v23 = vpop.f32.mrf.mxu2  ;;  %v236_v24 = vpop.f32.mrf.mxu3 }
  0xa7   : > { %v248_v15 = vmul.f32 %v204_v23, %v204_v23  ;;  %v253_v16 = vmul.f32 %v236_v24, %v236_v24 }
  0xa9   : > { %v198_v27 = vpop.f32.mrf.mxu0  ;;  %v230_v28 = vpop.f32.mrf.mxu1  ;;  %v258_v26 = vadd.f32 %v253_v16, %v248_v15 }
  0xaa   : > { %v246_v49 = vmul.f32 %v198_v27, %v198_v27  ;;  %v251_v50 = vmul.f32 %v230_v28, %v230_v28 }
  0xac   : > { %v256_v58 = vadd.f32 %v251_v50, %v246_v49 }
  0xae   : > { %v311_v30 = vpop.f32.mrf.mxu2  ;;  %v343_v31 = vpop.f32.mrf.mxu3 }
  0xaf   : > { %v363_v32 = vmul.f32 %v311_v30, %v311_v30  ;;  %v368_v33 = vmul.f32 %v343_v31, %v343_v31 }
  0xb1   : > { %v373_v36 = vadd.f32 %v368_v33, %v363_v32  ;;  %v430_v37 = vpop.f32.mrf.mxu0  ;;  %v462_v38 = vpop.f32.mrf.mxu1 }
  0xb2   : > { %v482_v39 = vmul.f32 %v430_v37, %v430_v37  ;;  %v487_v40 = vmul.f32 %v462_v38, %v462_v38 }
  0xb3   : > { %v378_v41 = vadd.f32 %v373_v36, %v254_v29 }
  0xb4   : > { %v492_v42 = vadd.f32 %v487_v40, %v482_v39 }
  0xb6   : > { %v314_v44 = vpop.f32.mrf.mxu2  ;;  %v346_v45 = vpop.f32.mrf.mxu3  ;;  %v497_v46 = vadd.f32 %v492_v42, %v378_v41 }
  0xb7   : > { %v364_v47 = vmul.f32 %v314_v44, %v314_v44  ;;  %v369_v48 = vmul.f32 %v346_v45, %v346_v45 }
  0xb8   : > { %502 = vst [vmem:[%s881_s5] sm:$0xff] %v497_v46 }
  0xb9   : > { %v374_v51 = vadd.f32 %v369_v48, %v364_v47  ;;  %v433_v52 = vpop.f32.mrf.mxu0  ;;  %v465_v53 = vpop.f32.mrf.mxu1 }
  0xba   : > { %v483_v54 = vmul.f32 %v433_v52, %v433_v52  ;;  %v488_v55 = vmul.f32 %v465_v53, %v465_v53 }
  0xbb   : > { %v379_v56 = vadd.f32 %v374_v51, %v255_v43 }
  0xbc   : > { %v493_v57 = vadd.f32 %v488_v55, %v483_v54 }
  0xbe   : > { %v317_v59 = vpop.f32.mrf.mxu2  ;;  %v349_v60 = vpop.f32.mrf.mxu3  ;;  %v498_v61 = vadd.f32 %v493_v57, %v379_v56 }
  0xbf   : > { %v365_v62 = vmul.f32 %v317_v59, %v317_v59  ;;  %v370_v63 = vmul.f32 %v349_v60, %v349_v60 }
  0xc0   : > { %503 = vst [vmem:[%s881_s5 + $0x8] sm:$0xff] %v498_v61 }
  0xc1   : > { %v375_v2 = vadd.f32 %v370_v63, %v365_v62  ;;  %v436_v3 = vpop.f32.mrf.mxu0  ;;  %v468_v4 = vpop.f32.mrf.mxu1 }
  0xc2   : > { %v484_v5 = vmul.f32 %v436_v3, %v436_v3  ;;  %v489_v6 = vmul.f32 %v468_v4, %v468_v4 }
  0xc3   : > { %v380_v7 = vadd.f32 %v375_v2, %v256_v58 }
  0xc4   : > { %v494_v8 = vadd.f32 %v489_v6, %v484_v5 }
  0xc6   : > { %v320_v10 = vpop.f32.mrf.mxu2  ;;  %v352_v11 = vpop.f32.mrf.mxu3  ;;  %v499_v12 = vadd.f32 %v494_v8, %v380_v7 }
  0xc7   : > { %v366_v13 = vmul.f32 %v320_v10, %v320_v10  ;;  %v371_v14 = vmul.f32 %v352_v11, %v352_v11 }
  0xc8   : > { %504 = vst [vmem:[%s881_s5 + $0x10] sm:$0xff] %v499_v12 }
  0xc9   : > { %v376_v17 = vadd.f32 %v371_v14, %v366_v13  ;;  %v439_v18 = vpop.f32.mrf.mxu0  ;;  %v471_v19 = vpop.f32.mrf.mxu1 }
  0xca   : > { %v485_v20 = vmul.f32 %v439_v18, %v439_v18  ;;  %v490_v21 = vmul.f32 %v471_v19, %v471_v19 }
  0xcb   : > { %v381_v22 = vadd.f32 %v376_v17, %v257_v9 }
  0xcc   : > { %v495_v25 = vadd.f32 %v490_v21, %v485_v20 }
  0xce   : > { %v323_v27 = vpop.f32.mrf.mxu2  ;;  %v355_v28 = vpop.f32.mrf.mxu3  ;;  %v500_v29 = vadd.f32 %v495_v25, %v381_v22 }
  0xcf   : > { %v367_v30 = vmul.f32 %v323_v27, %v323_v27  ;;  %v372_v31 = vmul.f32 %v355_v28, %v355_v28 }
  0xd0   : > { %505 = vst [vmem:[%s881_s5 + $0x18] sm:$0xff] %v500_v29 }
  0xd1   : > { %v377_v23 = vadd.f32 %v372_v31, %v367_v30  ;;  %v442_v24 = vpop.f32.mrf.mxu0  ;;  %v474_v32 = vpop.f32.mrf.mxu1 }
  0xd2   : > { %v486_v33 = vmul.f32 %v442_v24, %v442_v24  ;;  %v491_v34 = vmul.f32 %v474_v32, %v474_v32 }
  0xd3   : > { %v382_v35 = vadd.f32 %v377_v23, %v258_v26 }
  0xd4   : > { %v496_v36 = vadd.f32 %v491_v34, %v486_v33 }
  0xd6   : > { %v501_v37 = vadd.f32 %v496_v36, %v382_v35 }
  0xd8   : > { %506 = vst [vmem:[%s881_s5 + $0x20] sm:$0xff] %v501_v37 }
  0xd9   : > { %706 = shalt.err (!%p703_p3)
}
  0xda   : > { %s743_s29 = smov 128   ;;  %s744_s30 = smov 8  }
  0xdb   : > { %637 = dma.vmem_to_hbm [thread:$0]  (%p798_p5), %s521_s13, 640, %s523_s16, %s508_s17, %s743_s29, %s743_s29, %s744_s30  }
  0xdc PF: > { %p643_p4 = scmp.ge.s32.totalorder %s741_s12, 2  ;;  %s537_s3 = sand.u32 1, %s729_s9  }
  0xdd   : > { %s538_s27 = scalar_lea.sflag [#allocation3], %s537_s3 }
  0xde   : > { %p640_p7 = pnand %p643_p4, %p802_p6 }
  0xe0   : > { %p641_p8 = pneg %p640_p7 }
  0xe2   : > { %724 = dma.done.wait (%p641_p8), %s538_s27, 640  }
  0xe3   : > { %726 = vsyncadd (%p641_p8), %s538_s27, 4294966656  ;;  %p12_p9 = scmp.ge.s32.totalorder %s785_s15, 4   ;;  %s927_s9 = smov %s733_s10 }
  0xe4   : > { %s928_s10 = smov %s737_s11  ;;  %s929_s11 = smov %s796_s18 }
  0xe5   : > { %s930_s12 = smov %s785_s15  ;;  %14 = sbr.rel (!%p12_p9) target bundleno = 3 (0x3), region = 65 }
  0xea   :  { %544 = vsyncpa [#allocation3], 1 }
  0xeb   :  { %546 = vsyncpa [#allocation3 + $0x1], 1 }

</bundles_post_ra>
